<compile_context>
chip_gen: v7x
topology: tpu7x:2x2x1
jax: 0.10.0
libtpu: 0.0.40
codegen_flags: <defaults>
</compile_context>

<pallas_src>
import jax
import jax.numpy as jnp
from jax.experimental import pallas as pl
from jax.experimental.pallas import tpu as pltpu

# ---------------------------------------------------------------------------
# Problem sizes (small, consistent with the module: dim_series = L, channels)
# ---------------------------------------------------------------------------
N = 2          # batch
C = 8          # in_channels == out_channels
L = 128        # dim_series
K = 3          # size_kernel
DIL = 1        # dilation
PAD = (K // 2) * DIL
EPS = 1e-5     # nn.LayerNorm default eps

NC = N * C          # rows of the batch-stacked slab
KNC1 = K * NC + 1   # im2col rows + folded-bias row

MATMUL_DTYPE = jnp.float32  # set to jnp.bfloat16 when scaling C/L/batch


def _resblock_stack_kernel(x_ref, w_ref, o_ref):
    """Grid step b applies res-block b to the resident activation in o_ref.

    x_ref : (NC, L)            input slab (read once, at step 0)
    w_ref : (1, 2, NC, KNC1)   block b's two packed conv matrices (bias folded)
    o_ref : (NC, L)            resident activation / final output slab
    """
    b = pl.program_id(0)

    @pl.when(b == 0)
    def _():
        o_ref[...] = x_ref[...]

    x = o_ref[...].astype(jnp.float32)

    inv_l = jnp.float32(1.0 / L)

    def layer_norm(a):
        # Two-pass variance E[(x - mu)^2]: robust, the extra VPU pass is free.
        mu = jnp.sum(a, axis=-1, keepdims=True) * inv_l
        cen = a - mu
        var = jnp.sum(cen * cen, axis=-1, keepdims=True) * inv_l
        return cen * jax.lax.rsqrt(var + EPS)

    # Boundary masks / ones row for the convs (hoisted: built once, used twice).
    lane = jax.lax.broadcasted_iota(jnp.int32, (NC, L), 1)
    first_col = lane == 0
    last_col = lane == (L - 1)
    ones_row = jnp.ones((1, L), jnp.float32)

    def conv1d(a, w):
        # padding=1, dilation=1 taps via XLU rolls + boundary zeroing:
        #   k=0 -> x[l-1] (zero at l=0), k=1 -> x[l], k=2 -> x[l+1] (zero at L-1)
        a_m = jnp.where(first_col, 0.0, pltpu.roll(a, shift=1, axis=1))
        a_p = jnp.where(last_col, 0.0, pltpu.roll(a, shift=L - 1, axis=1))
        # Bias is folded: last rhs row is ones, last weight column is the bias.
        rhs = jnp.concatenate([a_m, a, a_p, ones_row], axis=0)       # (KNC1, L)
        return jnp.dot(w, rhs.astype(MATMUL_DTYPE),
                       preferred_element_type=jnp.float32)

    # residual branch: LN -> ReLU -> conv -> LN -> ReLU -> conv
    h = conv1d(jax.nn.relu(layer_norm(x)), w_ref[0, 0])
    h = conv1d(jax.nn.relu(layer_norm(h)), w_ref[0, 1])

    # identity link (Identity) + residual; after_addition is Identity.
    o_ref[...] = (x + h).astype(o_ref.dtype)


# ---------------------------------------------------------------------------
# Hoisted weight packing (done ONCE at parameter-load time, not per call)
# ---------------------------------------------------------------------------
def pack_block_weights(w1, b1, w2, b2):
    """Pack one block's conv params -> (2, NC, KNC1), bias folded as last column.

    W[n*C + c, k*NC + n*C + c'] = w[c, c', k]; zero across batch blocks so one
    (NC, KNC1) @ (KNC1, L) matmul handles all batch elements at once.
    NOTE: block-diagonal packing is O((N*C)^2*K) -- fine at N=2, restructure
    (shared (C, K*C) weight, batch on lanes / parallel grid axis) before scaling.
    """
    def one(w, bvec):
        eye_n = jnp.eye(N, dtype=jnp.float32)
        taps = [jnp.kron(eye_n, w[:, :, k]) for k in range(K)]   # K x (NC, NC)
        bias_col = jnp.tile(bvec, N)[:, None]                    # (NC, 1)
        return jnp.concatenate(taps + [bias_col], axis=1)        # (NC, KNC1)

    return jnp.stack([one(w1, b1), one(w2, b2)]).astype(MATMUL_DTYPE)


def preact_resblock_stack(x, w_packed):
    """Run B fused pre-activated res-blocks in a single pallas_call.

    x        : (N, C, L) float32
    w_packed : (B, 2, NC, KNC1) from pack_block_weights (hoisted packing).
    """
    n_blocks = w_packed.shape[0]
    x2d = x.reshape(NC, L)

    out2d = pl.pallas_call(
        _resblock_stack_kernel,
        out_shape=jax.ShapeDtypeStruct((NC, L), x.dtype),
        grid=(n_blocks,),
        in_specs=[
            pl.BlockSpec((NC, L), lambda b: (0, 0)),                 # x: fetched once
            pl.BlockSpec((1, 2, NC, KNC1), lambda b: (b, 0, 0, 0)),  # per-block weights
        ],
        out_specs=pl.BlockSpec((NC, L), lambda b: (0, 0)),           # resident activation
        input_output_aliases={0: 0},                                 # out may reuse x's HBM
        compiler_params=pltpu.CompilerParams(
            dimension_semantics=("arbitrary",)),                     # carried dependency
    )(x2d, w_packed)

    return out2d.reshape(N, C, L)


# ---------------------------------------------------------------------------
# Pure-JAX reference (single block) for correctness checking
# ---------------------------------------------------------------------------
def _reference_block(x, w1, b1, w2, b2):
    def ln(a):
        mu = jnp.mean(a, axis=-1, keepdims=True)
        var = jnp.mean((a - mu) ** 2, axis=-1, keepdims=True)
        return (a - mu) / jnp.sqrt(var + EPS)

    def conv(a, w, b):
        out = jax.lax.conv_general_dilated(
            a, w, window_strides=(1,), padding=[(PAD, PAD)],
            rhs_dilation=(DIL,), dimension_numbers=("NCH", "OIH", "NCH"))
        return out + b[None, :, None]

    h = conv(jax.nn.relu(ln(x)), w1, b1)
    h = conv(jax.nn.relu(ln(h)), w2, b2)
    return x + h


if __name__ == "__main__":
    B_BLOCKS = 4
    key = jax.random.PRNGKey(0)
    keys = jax.random.split(key, 1 + 4 * B_BLOCKS)
    x = jax.random.normal(keys[0], (N, C, L), jnp.float32)

    scale = (C * K) ** -0.5
    params = []
    for i in range(B_BLOCKS):
        kw1, kb1, kw2, kb2 = keys[1 + 4 * i: 5 + 4 * i]
        params.append((
            jax.random.normal(kw1, (C, C, K), jnp.float32) * scale,
            jax.random.normal(kb1, (C,), jnp.float32) * 0.1,
            jax.random.normal(kw2, (C, C, K), jnp.float32) * scale,
            jax.random.normal(kb2, (C,), jnp.float32) * 0.1,
        ))

    # Hoisted packing: done once at parameter-load time, reused every call.
    w_packed = jnp.stack([pack_block_weights(*p) for p in params])  # (B, 2, NC, KNC1)

    run = jax.jit(preact_resblock_stack)

    # (1) B=1: exactly the original module's forward pass.
    out1 = jax.block_until_ready(run(x, w_packed[:1]))
    ref1 = _reference_block(x, *params[0])
    if not jnp.allclose(out1, ref1, atol=1e-4, rtol=1e-4):
        raise AssertionError("Pallas single resblock mismatch vs reference")

    # (2) Fused B-block stack in ONE pallas_call (amortizes dispatch + DMA).
    outB = jax.block_until_ready(run(x, w_packed))
    refB = x
    for p in params:
        refB = _reference_block(refB, *p)
    if not jnp.allclose(outB, refB, atol=1e-4, rtol=1e-4):
        raise AssertionError("Pallas fused resblock stack mismatch vs reference")

    print("KERNEL_OK")
</pallas_src>

<mosaic_0001>
module attributes {stable_mosaic.version = 11 : i64} {
  func.func @_resblock_stack_kernel(%arg0: i32, %arg1: memref<16x128xf32, #tpu.memory_space<vmem>>, %arg2: memref<1x2x16x49xf32, #tpu.memory_space<vmem>>, %arg3: memref<16x128xf32, #tpu.memory_space<vmem>>) attributes {dimension_semantics = [#tpu.dimension_semantics<arbitrary>], iteration_bounds = array<i64: 1>, scalar_prefetch = 0 : i64, scratch_operands = 0 : i64, tpu.core_type = #tpu.core_type<tc>, window_params = [{pipeline_mode = #tpu.pipeline_mode<synchronous>, transform_indices = @transform_0, window_bounds = array<i64: 16, 128>}, {transform_indices = @transform_1, window_bounds = array<i64: 1, 2, 16, 49>}, {pipeline_mode = #tpu.pipeline_mode<synchronous>, transform_indices = @transform_2, window_bounds = array<i64: 16, 128>}]} {
    %c0_i32 = arith.constant 0 : i32
    %0 = arith.cmpi eq, %arg0, %c0_i32 : i32
    %1 = arith.extui %0 : i1 to i32
    %c0_i32_0 = arith.constant 0 : i32
    %2 = arith.cmpi ne, %1, %c0_i32_0 : i32
    scf.if %2 {
      %c0_33 = arith.constant 0 : index
      %c0_34 = arith.constant 0 : index
      %68 = vector.load %arg1[%c0_33, %c0_34] : memref<16x128xf32, #tpu.memory_space<vmem>>, vector<16x128xf32>
      %c0_35 = arith.constant 0 : index
      %c0_36 = arith.constant 0 : index
      %69 = vector.load %arg3[%c0_35, %c0_36] : memref<16x128xf32, #tpu.memory_space<vmem>>, vector<16x128xf32>
      tpu.vector_store %arg3[%c0_35, %c0_36], %68 {strides = array<i32>} : memref<16x128xf32, #tpu.memory_space<vmem>>, vector<16x128xf32>,
    } else {
    }
    %c0 = arith.constant 0 : index
    %c0_1 = arith.constant 0 : index
    %3 = vector.load %arg3[%c0, %c0_1] : memref<16x128xf32, #tpu.memory_space<vmem>>, vector<16x128xf32>
    %4 = tpu.iota {dimensions = array<i32: 1>} : vector<16x128xi32>
    %c0_i32_2 = arith.constant 0 : i32
    %5 = vector.broadcast %c0_i32_2 : i32 to vector<16x128xi32>
    %6 = arith.cmpi eq, %4, %5 : vector<16x128xi32>
    %c127_i32 = arith.constant 127 : i32
    %7 = vector.broadcast %c127_i32 : i32 to vector<16x128xi32>
    %8 = arith.cmpi eq, %4, %7 : vector<16x128xi32>
    %cst = arith.constant 1.000000e+00 : f32
    %9 = vector.broadcast %cst : f32 to vector<1x128xf32>
    %cst_3 = arith.constant dense<0.000000e+00> : vector<16xf32>
    %10 = vector.multi_reduction <add>, %3, %cst_3 [1] : vector<16x128xf32> to vector<16xf32>
    %11 = vector.shape_cast %10 : vector<16xf32> to vector<16x1xf32>
    %cst_4 = arith.constant 7.812500e-03 : f32
    %12 = vector.broadcast %cst_4 : f32 to vector<16x1xf32>
    %13 = arith.mulf %11, %12 : vector<16x1xf32>
    %14 = vector.broadcast %13 : vector<16x1xf32> to vector<16x128xf32>
    %15 = arith.subf %3, %14 : vector<16x128xf32>
    %16 = arith.mulf %15, %15 : vector<16x128xf32>
    %cst_5 = arith.constant dense<0.000000e+00> : vector<16xf32>
    %17 = vector.multi_reduction <add>, %16, %cst_5 [1] : vector<16x128xf32> to vector<16xf32>
    %18 = vector.shape_cast %17 : vector<16xf32> to vector<16x1xf32>
    %cst_6 = arith.constant 7.812500e-03 : f32
    %19 = vector.broadcast %cst_6 : f32 to vector<16x1xf32>
    %20 = arith.mulf %18, %19 : vector<16x1xf32>
    %cst_7 = arith.constant 9.99999974E-6 : f32
    %21 = vector.broadcast %cst_7 : f32 to vector<16x1xf32>
    %22 = arith.addf %20, %21 : vector<16x1xf32>
    %23 = math.rsqrt %22 : vector<16x1xf32>
    %24 = vector.broadcast %23 : vector<16x1xf32> to vector<16x128xf32>
    %25 = arith.mulf %15, %24 : vector<16x128xf32>
    %cst_8 = arith.constant 0.000000e+00 : f32
    %26 = vector.broadcast %cst_8 : f32 to vector<16x128xf32>
    %27 = arith.maximumf %25, %26 : vector<16x128xf32>
    %c0_9 = arith.constant 0 : index
    %c0_10 = arith.constant 0 : index
    %c0_11 = arith.constant 0 : index
    %c0_12 = arith.constant 0 : index
    %28 = vector.load %arg2[%c0_9, %c0_10, %c0_11, %c0_12] : memref<1x2x16x49xf32, #tpu.memory_space<vmem>>, vector<1x1x16x49xf32>
    %29 = vector.shape_cast %28 : vector<1x1x16x49xf32> to vector<16x49xf32>
    %c1_i32 = arith.constant 1 : i32
    %30 = tpu.dynamic_rotate %27 by %c1_i32 dim 1 : vector<16x128xf32>, i32 -> vector<16x128xf32>
    %cst_13 = arith.constant 0.000000e+00 : f32
    %31 = vector.broadcast %cst_13 : f32 to vector<16x128xf32>
    %32 = arith.select %6, %31, %30 : vector<16x128xi1>, vector<16x128xf32>
    %c127_i32_14 = arith.constant 127 : i32
    %33 = tpu.dynamic_rotate %27 by %c127_i32_14 dim 1 : vector<16x128xf32>, i32 -> vector<16x128xf32>
    %cst_15 = arith.constant 0.000000e+00 : f32
    %34 = vector.broadcast %cst_15 : f32 to vector<16x128xf32>
    %35 = arith.select %8, %34, %33 : vector<16x128xi1>, vector<16x128xf32>
    %36 = tpu.concatenate %32, %27, %35, %9 in 0 : vector<16x128xf32>, vector<16x128xf32>, vector<16x128xf32>, vector<1x128xf32> -> vector<49x128xf32>
    %cst_16 = arith.constant dense<0.000000e+00> : vector<16x128xf32>
    %37 = tpu.matmul %29, %36, %cst_16 {dimension_numbers = #tpu.dot_dimension_numbers<[1], [0], [0], [1], [0, 0, 1, 1], [], []>} : vector<16x49xf32>, vector<49x128xf32>, vector<16x128xf32> -> vector<16x128xf32>
    %cst_17 = arith.constant dense<0.000000e+00> : vector<16xf32>
    %38 = vector.multi_reduction <add>, %37, %cst_17 [1] : vector<16x128xf32> to vector<16xf32>
    %39 = vector.shape_cast %38 : vector<16xf32> to vector<16x1xf32>
    %cst_18 = arith.constant 7.812500e-03 : f32
    %40 = vector.broadcast %cst_18 : f32 to vector<16x1xf32>
    %41 = arith.mulf %39, %40 : vector<16x1xf32>
    %42 = vector.broadcast %41 : vector<16x1xf32> to vector<16x128xf32>
    %43 = arith.subf %37, %42 : vector<16x128xf32>
    %44 = arith.mulf %43, %43 : vector<16x128xf32>
    %cst_19 = arith.constant dense<0.000000e+00> : vector<16xf32>
    %45 = vector.multi_reduction <add>, %44, %cst_19 [1] : vector<16x128xf32> to vector<16xf32>
    %46 = vector.shape_cast %45 : vector<16xf32> to vector<16x1xf32>
    %cst_20 = arith.constant 7.812500e-03 : f32
    %47 = vector.broadcast %cst_20 : f32 to vector<16x1xf32>
    %48 = arith.mulf %46, %47 : vector<16x1xf32>
    %cst_21 = arith.constant 9.99999974E-6 : f32
    %49 = vector.broadcast %cst_21 : f32 to vector<16x1xf32>
    %50 = arith.addf %48, %49 : vector<16x1xf32>
    %51 = math.rsqrt %50 : vector<16x1xf32>
    %52 = vector.broadcast %51 : vector<16x1xf32> to vector<16x128xf32>
    %53 = arith.mulf %43, %52 : vector<16x128xf32>
    %cst_22 = arith.constant 0.000000e+00 : f32
    %54 = vector.broadcast %cst_22 : f32 to vector<16x128xf32>
    %55 = arith.maximumf %53, %54 : vector<16x128xf32>
    %c0_23 = arith.constant 0 : index
    %c1 = arith.constant 1 : index
    %c0_24 = arith.constant 0 : index
    %c0_25 = arith.constant 0 : index
    %56 = vector.load %arg2[%c0_23, %c1, %c0_24, %c0_25] : memref<1x2x16x49xf32, #tpu.memory_space<vmem>>, vector<1x1x16x49xf32>
    %57 = vector.shape_cast %56 : vector<1x1x16x49xf32> to vector<16x49xf32>
    %c1_i32_26 = arith.constant 1 : i32
    %58 = tpu.dynamic_rotate %55 by %c1_i32_26 dim 1 : vector<16x128xf32>, i32 -> vector<16x128xf32>
    %cst_27 = arith.constant 0.000000e+00 : f32
    %59 = vector.broadcast %cst_27 : f32 to vector<16x128xf32>
    %60 = arith.select %6, %59, %58 : vector<16x128xi1>, vector<16x128xf32>
    %c127_i32_28 = arith.constant 127 : i32
    %61 = tpu.dynamic_rotate %55 by %c127_i32_28 dim 1 : vector<16x128xf32>, i32 -> vector<16x128xf32>
    %cst_29 = arith.constant 0.000000e+00 : f32
    %62 = vector.broadcast %cst_29 : f32 to vector<16x128xf32>
    %63 = arith.select %8, %62, %61 : vector<16x128xi1>, vector<16x128xf32>
    %64 = tpu.concatenate %60, %55, %63, %9 in 0 : vector<16x128xf32>, vector<16x128xf32>, vector<16x128xf32>, vector<1x128xf32> -> vector<49x128xf32>
    %cst_30 = arith.constant dense<0.000000e+00> : vector<16x128xf32>
    %65 = tpu.matmul %57, %64, %cst_30 {dimension_numbers = #tpu.dot_dimension_numbers<[1], [0], [0], [1], [0, 0, 1, 1], [], []>} : vector<16x49xf32>, vector<49x128xf32>, vector<16x128xf32> -> vector<16x128xf32>
    %66 = arith.addf %3, %65 : vector<16x128xf32>
    %c0_31 = arith.constant 0 : index
    %c0_32 = arith.constant 0 : index
    %67 = vector.load %arg3[%c0_31, %c0_32] : memref<16x128xf32, #tpu.memory_space<vmem>>, vector<16x128xf32>
    tpu.vector_store %arg3[%c0_31, %c0_32], %66 {strides = array<i32>} : memref<16x128xf32, #tpu.memory_space<vmem>>, vector<16x128xf32>,
    return
  }
  func.func @transform_0(%arg0: i32) -> (i32, i32) {
    %c0_i32 = arith.constant 0 : i32
    %c0_i32_0 = arith.constant 0 : i32
    %c0_i32_1 = arith.constant 0 : i32
    return %c0_i32, %c0_i32_0 : i32, i32
  }
  func.func @transform_1(%arg0: i32) -> (i32, i32, i32, i32) {
    %c0_i32 = arith.constant 0 : i32
    %c0_i32_0 = arith.constant 0 : i32
    %c0_i32_1 = arith.constant 0 : i32
    %c0_i32_2 = arith.constant 0 : i32
    return %arg0, %c0_i32, %c0_i32_0, %c0_i32_1 : i32, i32, i32, i32
  }
  func.func @transform_2(%arg0: i32) -> (i32, i32) {
    %c0_i32 = arith.constant 0 : i32
    %c0_i32_0 = arith.constant 0 : i32
    %c0_i32_1 = arith.constant 0 : i32
    return %c0_i32, %c0_i32_0 : i32, i32
  }
}

</mosaic_0001>

<bundles_post_ra>
// kernel: preact_resblock_stack.1
= control target key start
LH: loop header
LB: loop body
LE: loop exit
PB: predicated region body
PF: predicated region fallthrough
CT: control target
= control target key end

     0   :  { %7 = vsyncpa [#allocation3], 0  ;;  %s458_s9 = smov [#allocation2]   ;;  %s549_s0 = inlined_call_operand.vmem [shape: f32[16,128], index: 0, kind: input, shape index: {}, may-alias: {0,2}]   ;;  %s550_s1 = inlined_call_operand.hbm [shape: f32[1,2,16,49], index: 1, kind: input, shape index: {}]   ;;  %s551_s2 = inlined_call_operand.vmem [shape: f32[16,128], index: 2, kind: output, shape index: {}, may-alias: {0,2}]  }
   0x1   :  { %s15_s10 = sshll.u32 %s458_s9, 4  ;;  %s434_s13 = scalar_lea.hbm %s550_s1, 512  ;;  %s16_s10 = int_to_ptr.vmem [resolvable:$true] %s15_s10 }
   0x2   :  { %p435_p0 = scmp.ne.s32.totalorder %s550_s1, %s434_s13  ;;  %p438_p1 = scmp.lt.u32.totalorder %s434_s13, %s550_s1 }
   0x4   :  { %p440_p2 = pnand %p438_p1, %p435_p0 }
   0x6   :  { %443 = shalt.err (!%p440_p2)
}
   0x7   :  { %s444_s18 = scalar_lea.vmem %s16_s10, 512  ;;  %p449_p4 = scmp.lt.s32.totalorder %s16_s10, %s16_s10 }
   0x8   :  { %p445_p3 = scmp.ne.s32.totalorder %s16_s10, %s444_s18  ;;  %p450_p5 = scmp.lt.s32.totalorder %s444_s18, %s444_s18 }
   0xa   :  { %p451_p6 = por %p450_p5, %p449_p4 }
   0xc   :  { %p452_p7 = pnand %p451_p6, %p445_p3 }
   0xe   :  { %455 = shalt.err (!%p452_p7)
}
   0xf   :  { %s459_s19 = smov 128   ;;  %s460_s20 = smov 8  }
  0x10   :  { %21 = dma.hbm_to_vmem [thread:$0]  %s550_s1, 512, %s16_s10, [#allocation3], %s459_s19, %s459_s19, %s460_s20  }
  0x11   :  { %456 = dma.done.wait [#allocation3], 512  }
  0x12   :  { %457 = vsyncadd [#allocation3], 4294966784  ;;  %v494_v0 = vld [vmem:[%s549_s0] sm:$0xff]  ;;  %v500_v1 = vld [vmem:[%s549_s0 + $0x8] sm:$0xff]  ;;  %s461_s0 = smov 127   ;;  %s462_s1 = smov 1   ;;  %v35_v25 = vlaneseq }
  0x13   :  { %39 = vadd.xlane.f32.xlu0 %v494_v0  ;;  %v63_v24 = vld [vmem:[#allocation2] sm:$0xff]  ;;  %vm77_vm0 = vcmask 400384   ;;  %vm84_vm5 = vcmask 1040384   ;;  %v463_v37 = vmov 1.0   ;;  %v64_v38 = vld [vmem:[#allocation2 + $0x8] sm:$0xff]  ;;  %v188_v63 = vld [vmem:[#allocation2 + $0x10] sm:$0xff] }
  0x14   :  { %348 = vmatprep.mubr.msk.f32.mxu0 %vm77_vm0, %v63_v24  ;;  %v36_v26 = vand.u32 127, %v35_v25  ;;  %365 = vmatprep.mubr.msk.f32.mxu1 %vm77_vm0, %v188_v63 }
  0x16   :  { %vm314_vm1 = vcmp.ne.s32.totalorder %v36_v26, 0  ;;  %vm315_vm3 = vcmp.ne.s32.totalorder %v36_v26, 127 }
  0x17   :  { %41 = vadd.xlane.f32.xlu0 %v500_v1  ;;  %vm508_vm2 = vmpackc.low %vm314_vm1, %vm314_vm1 }
  0x18   :  { %vm516_vm4 = vmpackc.low %vm315_vm3, %vm315_vm3 }
  0xa0   :  { %v40_v2 = vpop.xlane.xlu0 %39 }
  0xa1   :  { %v43_v3 = vmul.f32 0.0078125, %v40_v2 }
  0xa3   :  { %v45_v4 = vsub.f32 %v494_v0, %v43_v3 }
  0xa4   :  { %v42_v5 = vpop.xlane.xlu0 %41 }
  0xa5   :  { %v44_v6 = vmul.f32 0.0078125, %v42_v5  ;;  %v47_v7 = vmul.f32 %v45_v4, %v45_v4 }
  0xa7   :  { %v46_v8 = vsub.f32 %v500_v1, %v44_v6  ;;  %49 = vadd.xlane.f32.xlu1 %v47_v7 }
  0xa9   :  { %v48_v9 = vmul.f32 %v46_v8, %v46_v8 }
  0xab   :  { %51 = vadd.xlane.f32.xlu1 %v48_v9 }
 0x134   :  { %v50_v10 = vpop.xlane.xlu1 %49 }
 0x135   :  { %v53_v11 = vmul.f32 0.0078125, %v50_v10  ;;  %v189_v10 = vld [vmem:[#allocation2 + $0x18] sm:$0xff] }
 0x137   :  { %v55_v12 = vadd.f32 1e-05, %v53_v11 }
 0x138   :  { %v52_v13 = vpop.xlane.xlu1 %51 }
 0x139   :  { %426 = vrsqrt.f32 %v55_v12  ;;  %v54_v14 = vmul.f32 0.0078125, %v52_v13 }
 0x13b   :  { %v56_v15 = vadd.f32 1e-05, %v54_v14 }
 0x13d   :  { %428 = vrsqrt.f32 %v56_v15 }
 0x143   :  { %v427_v16 = vpop.eup %426 }
 0x144   :  { %v59_v17 = vmul.f32 %v427_v16, %v45_v4 }
 0x146   :  { %v61_v20 = vmax.f32 %v59_v17, 0.0 }
 0x147   :  { %v429_v18 = vpop.eup %428 }
 0x148   :  { %v60_v19 = vmul.f32 %v429_v18, %v46_v8 }
 0x14a   :  { %v62_v21 = vmax.f32 %v60_v19, 0.0 }
 0x14c   :  { %v411_v22 = vpack.i.bf16 %v62_v21, %v61_v20  ;;  %v374_v23 = vpack.c.bf16 %v62_v21, %v61_v20 }
 0x14e   :  { %412 = vrot.lane.b32.xlu1 %v411_v22, %s461_s0  ;;  %407 = vrot.lane.b32.xlu0 %v411_v22, %s462_s1 }
 0x1c0   :  { %v408_v27 = vpop.permute.xlu0 %407  ;;  %v413_v30 = vpop.permute.xlu1 %412 }
 0x1c1   :  { %v410_v28 = vunpack.i.h.bf16 %v408_v27  ;;  %v409_v29 = vunpack.i.l.bf16 %v408_v27  ;;  %v415_v33 = vunpack.i.h.bf16 %v413_v30  ;;  %v414_v34 = vunpack.i.l.bf16 %v413_v30 }
 0x1c3   :  { %v368_v32 = vpack.c.bf16 %v410_v28, %v409_v29  ;;  %v378_v36 = vpack.c.bf16 %v415_v33, %v414_v34 }
 0x1c5   :  { %370 = vmatprep.subr.msk.bf16.mxu0 %vm508_vm2, %v368_v32 }
 0x1c6   :  { %373 = vmatpush3.bf16.msk.msra.mxu0 %vm508_vm2, %v368_v32 }
 0x1c7   :  { %375 = vmatprep.subr.bf16.mxu0 %v374_v23 }
 0x1ca   :  { %377 = vmatpush3.bf16.msra.mxu0 %v374_v23 }
 0x1cb   :  { %380 = vmatprep.subr.msk.bf16.mxu0 %vm516_vm4, %v378_v36 }
 0x1ce   :  { %383 = vmatpush3.bf16.msk.msra.mxu0 %vm516_vm4, %v378_v36 }
 0x1cf   :  { %346 = vmatprep.subr.msk.mxu0 %vm84_vm5, %v463_v37 }
 0x1d2   :  { %347 = vmatpush3.msk.msra.mxu0 %vm84_vm5, %v463_v37 }
 0x1d3   :  { %349 = vmatmul.mubr.msk.f32.vlgmr.msra.gmra.mrb[0].mxu0 %vm77_vm0, %v64_v38 }
 0x2a6   :  { %v350_v39 = vpop.f32.mrb[0].mxu0 }
 0x2a7   :  { %165 = vadd.xlane.f32.xlu0 %v350_v39  ;;  %v154_v40 = vpop.f32.mrb[1].mxu0 }
 0x2a8   :  { %163 = vadd.xlane.f32.xlu1 %v154_v40 }
 0x334   :  { %v166_v41 = vpop.xlane.xlu0 %165 }
 0x335   :  { %v168_v42 = vmul.f32 0.0078125, %v166_v41  ;;  %v164_v43 = vpop.xlane.xlu1 %163 }
 0x336   :  { %v167_v44 = vmul.f32 0.0078125, %v164_v43 }
 0x337   :  { %v170_v45 = vsub.f32 %v350_v39, %v168_v42 }
 0x338   :  { %v169_v46 = vsub.f32 %v154_v40, %v167_v44 }
 0x339   :  { %v172_v47 = vmul.f32 %v170_v45, %v170_v45 }
 0x33a   :  { %v171_v48 = vmul.f32 %v169_v46, %v169_v46 }
 0x33b   :  { %175 = vadd.xlane.f32.xlu1 %v172_v47 }
 0x33c   :  { %173 = vadd.xlane.f32.xlu0 %v171_v48 }
 0x3c8   :  { %v176_v49 = vpop.xlane.xlu1 %175 }
 0x3c9   :  { %v178_v50 = vmul.f32 0.0078125, %v176_v49  ;;  %v174_v51 = vpop.xlane.xlu0 %173 }
 0x3ca   :  { %v177_v52 = vmul.f32 0.0078125, %v174_v51 }
 0x3cb   :  { %v180_v53 = vadd.f32 1e-05, %v178_v50 }
 0x3cc   :  { %v179_v54 = vadd.f32 1e-05, %v177_v52 }
 0x3cd   :  { %430 = vrsqrt.f32 %v180_v53 }
 0x3ce   :  { %432 = vrsqrt.f32 %v179_v54 }
 0x3d7   :  { %v431_v55 = vpop.eup %430 }
 0x3d8   :  { %v433_v56 = vpop.eup %432  ;;  %v184_v57 = vmul.f32 %v431_v55, %v170_v45 }
 0x3d9   :  { %v183_v58 = vmul.f32 %v433_v56, %v169_v46 }
 0x3da   :  { %v186_v59 = vmax.f32 %v184_v57, 0.0 }
 0x3db   :  { %v185_v60 = vmax.f32 %v183_v58, 0.0 }
 0x3dd   :  { %v421_v61 = vpack.i.bf16 %v186_v59, %v185_v60  ;;  %v390_v62 = vpack.c.bf16 %v186_v59, %v185_v60 }
 0x3df   :  { %422 = vrot.lane.b32.xlu1 %v421_v61, %s461_s0  ;;  %417 = vrot.lane.b32.xlu0 %v421_v61, %s462_s1 }
 0x451   :  { %v418_v2 = vpop.permute.xlu0 %417  ;;  %v423_v5 = vpop.permute.xlu1 %422 }
 0x452   :  { %v420_v3 = vunpack.i.h.bf16 %v418_v2  ;;  %v419_v4 = vunpack.i.l.bf16 %v418_v2  ;;  %v425_v7 = vunpack.i.h.bf16 %v423_v5  ;;  %v424_v8 = vunpack.i.l.bf16 %v423_v5 }
 0x454   :  { %v384_v6 = vpack.c.bf16 %v420_v3, %v419_v4  ;;  %v394_v9 = vpack.c.bf16 %v425_v7, %v424_v8 }
 0x456   :  { %386 = vmatprep.subr.msk.bf16.mxu1 %vm508_vm2, %v384_v6 }
 0x457   :  { %389 = vmatpush3.bf16.msk.msra.mxu1 %vm508_vm2, %v384_v6 }
 0x458   :  { %391 = vmatprep.subr.bf16.mxu1 %v390_v62 }
 0x45b   :  { %393 = vmatpush3.bf16.msra.mxu1 %v390_v62 }
 0x45c   :  { %396 = vmatprep.subr.msk.bf16.mxu1 %vm516_vm4, %v394_v9 }
 0x45f   :  { %399 = vmatpush3.bf16.msk.msra.mxu1 %vm516_vm4, %v394_v9 }
 0x460   :  { %363 = vmatprep.subr.msk.mxu1 %vm84_vm5, %v463_v37 }
 0x463   :  { %364 = vmatpush3.msk.msra.mxu1 %vm84_vm5, %v463_v37 }
 0x464   :  { %366 = vmatmul.mubr.msk.f32.vlgmr.msra.gmra.mrb[0].mxu1 %vm77_vm0, %v189_v10 }
 0x537   :  { %v367_v11 = vpop.f32.mrb[0].mxu1 }
 0x538   :  { %v284_v12 = vadd.f32 %v367_v11, %v500_v1  ;;  %v274_v13 = vpop.f32.mrb[1].mxu1 }
 0x539   :  { %v283_v14 = vadd.f32 %v274_v13, %v494_v0 }
 0x53a   :  { %286 = vst [vmem:[%s551_s2 + $0x8] sm:$0xff] %v284_v12 }
 0x53b   :  { %285 = vst [vmem:[%s551_s2] sm:$0xff] %v283_v14 }
 0x53c   :  { %291 = vsyncpa [#allocation3], 1 }

</bundles_post_ra>
